<compile_context>
chip_gen: v7x
topology: tpu7x:2x2x1
jax: 0.10.0
libtpu: 0.0.40
codegen_flags: <defaults>
</compile_context>

<pallas_src>
import functools

import jax
import jax.numpy as jnp
from jax.experimental import pallas as pl
from jax.experimental.pallas import tpu as pltpu

LANE = 128
SUBLANE = 8


def _round_up(x, m):
    return ((x + m - 1) // m) * m


# ----------------------------------------------------------------------------
# Pallas kernels
# ----------------------------------------------------------------------------
def _nwp_mlp_kernel(x_ref, w_in_ref, b_in_ref, w_h_ref, b_h_ref,
                    w_out_ref, b_out_ref, o_ref, *, n_hidden_layers):
    """Full NWP_net forward (linear_map=False) for one batch tile."""
    x = x_ref[...]

    # Hoist loop-invariant loads / broadcasts out of the hidden-layer loop.
    b_in = b_in_ref[...]
    w_h = w_h_ref[...]
    b_h = b_h_ref[...]
    b_out = b_out_ref[...]

    # input_layer: Linear (no activation)
    h = jnp.dot(x, w_in_ref[...], preferred_element_type=jnp.float32) + b_in

    # hidden_layers: n applications of the SAME (Linear + ReLU) (shared weights)
    def hidden(hh):
        return jnp.maximum(
            jnp.dot(hh, w_h, preferred_element_type=jnp.float32) + b_h, 0.0)

    if n_hidden_layers <= 8:
        # fully-unrolled: maximum LLO scheduling visibility for short stacks
        for _ in range(n_hidden_layers):
            h = hidden(h)
    else:
        # deep stack: visible loop bounds code size / vreg live ranges
        h = jax.lax.fori_loop(0, n_hidden_layers, lambda _, hh: hidden(hh), h)

    # output_layer: Linear + ReLU
    out = jnp.maximum(
        jnp.dot(h, w_out_ref[...], preferred_element_type=jnp.float32) + b_out,
        0.0)
    o_ref[...] = out.astype(o_ref.dtype)


def _nwp_linear_map_kernel(x_ref, w_out_ref, b_out_ref, o_ref):
    """NWP_net forward when settings['linear_map'] is True: only output layer."""
    x = x_ref[...]
    b_out = b_out_ref[...]
    out = jnp.maximum(
        jnp.dot(x, w_out_ref[...], preferred_element_type=jnp.float32) + b_out,
        0.0)
    o_ref[...] = out.astype(o_ref.dtype)


# ----------------------------------------------------------------------------
# Wrapper
# ----------------------------------------------------------------------------
def nwp_net_forward(x, params, settings, *, batch_tile=1024):
    """x: (B, features) float32.  Returns logits (B, out_size)."""
    B, x_feat = x.shape
    in_size = settings["input_size"]
    hid = settings["hidden_size"]
    out_size = settings["out_size"]
    n_hidden = settings["n_hidden_layers"]
    linear_map = settings["linear_map"]

    if linear_map:
        if x_feat != hid:
            raise ValueError(
                "linear_map=True requires x features == hidden_size "
                f"(got {x_feat} vs {hid})")
        feat = hid
    else:
        if x_feat != in_size:
            raise ValueError(f"x features {x_feat} != input_size {in_size}")
        feat = in_size

    # Lane-dense padded feature dims (multiples of 128).
    feat_p = _round_up(feat, LANE)
    hid_p = _round_up(hid, LANE)
    out_p = _round_up(out_size, LANE)

    # Resident (grid-invariant) weight footprint in f32 elements.
    if linear_map:
        weight_elems = hid_p * out_p + out_p
    else:
        weight_elems = (feat_p * hid_p + hid_p * hid_p + hid_p * out_p
                        + 2 * hid_p + out_p)

    # Batch tiling.  Shrink the tile if the double-buffered x/out tiles plus
    # resident weights plus live intermediates would blow the VMEM budget.
    f32_bytes = 4
    vmem_budget = 40 << 20  # conservative: fits v7x 64 MiB with headroom

    def vmem_est(bt_):
        # 2x buffers for x and out tiles (pipeline), 2x weights (buffer pair),
        # ~4 live (bt, hid_p) intermediates inside the kernel body.
        return f32_bytes * (2 * bt_ * (feat_p + out_p) + 2 * weight_elems
                            + 4 * bt_ * hid_p)

    batch_tile = max(SUBLANE, _round_up(batch_tile, SUBLANE))
    while batch_tile > 2 * SUBLANE and vmem_est(batch_tile) > vmem_budget:
        batch_tile = _round_up(batch_tile // 2, SUBLANE)

    if B <= batch_tile:
        bt = _round_up(B, SUBLANE)
        B_pad = bt
    else:
        bt = batch_tile
        B_pad = _round_up(B, bt)
        if (B_pad // bt) % 2:          # keep grid length even for 2-TC chips
            B_pad += bt
    grid = (B_pad // bt,)

    # Zero-pad batch rows and feature columns (pure layout plumbing; padded
    # weight rows / bias columns are zero so padded columns stay exactly 0).
    xp = jnp.pad(x, ((0, B_pad - B), (0, feat_p - feat)))

    def pad2(a, rows, cols):
        return jnp.pad(a, ((0, rows - a.shape[0]), (0, cols - a.shape[1])))

    def full_spec(shape):
        # grid-invariant operand: constant index_map keeps it resident in VMEM
        return pl.BlockSpec(shape, lambda i: tuple(0 for _ in shape))

    x_spec = pl.BlockSpec((bt, feat_p), lambda i: (i, 0))
    out_spec = pl.BlockSpec((bt, out_p), lambda i: (i, 0))

    if linear_map:
        kernel = _nwp_linear_map_kernel
        w_out = pad2(params["w_out"], hid_p, out_p)
        b_out = pad2(params["b_out"], 1, out_p)
        in_specs = [x_spec, full_spec((hid_p, out_p)), full_spec((1, out_p))]
        args = (xp, w_out, b_out)
        flops = 2 * B_pad * hid_p * out_p
    else:
        kernel = functools.partial(_nwp_mlp_kernel, n_hidden_layers=n_hidden)
        w_in = pad2(params["w_in"], feat_p, hid_p)
        b_in = pad2(params["b_in"], 1, hid_p)
        w_h = pad2(params["w_h"], hid_p, hid_p)
        b_h = pad2(params["b_h"], 1, hid_p)
        w_out = pad2(params["w_out"], hid_p, out_p)
        b_out = pad2(params["b_out"], 1, out_p)
        in_specs = [x_spec,
                    full_spec((feat_p, hid_p)), full_spec((1, hid_p)),
                    full_spec((hid_p, hid_p)), full_spec((1, hid_p)),
                    full_spec((hid_p, out_p)), full_spec((1, out_p))]
        args = (xp, w_in, b_in, w_h, b_h, w_out, b_out)
        flops = 2 * B_pad * (feat_p * hid_p
                             + n_hidden * hid_p * hid_p
                             + hid_p * out_p)

    bytes_accessed = f32_bytes * (B_pad * feat_p + B_pad * out_p + weight_elems)
    vmem_limit = int(min(48 << 20, max(16 << 20, 2 * vmem_est(bt))))

    out = pl.pallas_call(
        kernel,
        out_shape=jax.ShapeDtypeStruct((B_pad, out_p), x.dtype),
        grid_spec=pltpu.PrefetchScalarGridSpec(
            num_scalar_prefetch=0,
            grid=grid,
            in_specs=in_specs,
            out_specs=out_spec,
        ),
        compiler_params=pltpu.CompilerParams(
            dimension_semantics=("parallel",),
            vmem_limit_bytes=vmem_limit),
        cost_estimate=pl.CostEstimate(
            flops=int(flops), transcendentals=0,
            bytes_accessed=int(bytes_accessed)),
    )(*args)

    # Slice the valid batch rows / output columns back out (lane padding).
    return out[:B, :out_size]


# ----------------------------------------------------------------------------
# Deterministic parameter init (shapes follow NWP_net.__init__)
# ----------------------------------------------------------------------------
def init_params(key, settings):
    in_size = settings["input_size"]
    hid = settings["hidden_size"]
    out_size = settings["out_size"]
    k = jax.random.split(key, 6)
    scale = 0.1
    return {
        # stored as (in_features, out_features) == PyTorch weight transposed
        "w_in": scale * jax.random.normal(k[0], (in_size, hid), jnp.float32),
        "b_in": scale * jax.random.normal(k[1], (1, hid), jnp.float32),
        "w_h": scale * jax.random.normal(k[2], (hid, hid), jnp.float32),
        "b_h": scale * jax.random.normal(k[3], (1, hid), jnp.float32),
        "w_out": scale * jax.random.normal(k[4], (hid, out_size), jnp.float32),
        "b_out": scale * jax.random.normal(k[5], (1, out_size), jnp.float32),
    }


def reference_forward(x, params, settings):
    """Pure-JAX reference of NWP_net.forward for verification."""
    if settings["linear_map"]:
        h = x
    else:
        h = x @ params["w_in"] + params["b_in"]
        for _ in range(settings["n_hidden_layers"]):
            h = jnp.maximum(h @ params["w_h"] + params["b_h"], 0.0)
    return jnp.maximum(h @ params["w_out"] + params["b_out"], 0.0)


if __name__ == "__main__":
    key = jax.random.PRNGKey(0)
    kx, kp, kx2, kp2 = jax.random.split(key, 4)

    # ---- 1) small-batch MLP path (single grid step) ------------------------
    settings = {
        "input_size": 16,
        "hidden_size": 32,
        "out_size": 8,
        "n_hidden_layers": 2,
        "linear_map": False,
    }
    B = 16
    x = jax.random.normal(kx, (B, settings["input_size"]), jnp.float32)
    params = init_params(kp, settings)

    logits = jax.block_until_ready(nwp_net_forward(x, params, settings))
    ref = reference_forward(x, params, settings)
    assert logits.shape == (B, settings["out_size"])
    assert jnp.allclose(logits, ref, atol=1e-5, rtol=1e-5)

    # ---- 2) ragged larger batch -> multi-step (even) grid -------------------
    B2 = 1000
    x2 = jax.random.normal(kx2, (B2, settings["input_size"]), jnp.float32)
    logits2 = jax.block_until_ready(
        nwp_net_forward(x2, params, settings, batch_tile=256))
    ref2 = reference_forward(x2, params, settings)
    assert logits2.shape == (B2, settings["out_size"])
    assert jnp.allclose(logits2, ref2, atol=1e-4, rtol=1e-5)

    # ---- 3) deep shared-weight stack (fori_loop path) -----------------------
    settings_deep = dict(settings, n_hidden_layers=10)
    logits3 = jax.block_until_ready(nwp_net_forward(x, params, settings_deep))
    ref3 = reference_forward(x, params, settings_deep)
    assert jnp.allclose(logits3, ref3, atol=1e-5, rtol=1e-5)

    # ---- 4) linear_map=True path (requires input_size == hidden_size) -------
    settings_lm = {
        "input_size": 32,
        "hidden_size": 32,
        "out_size": 8,
        "n_hidden_layers": 2,
        "linear_map": True,
    }
    params_lm = init_params(kp2, settings_lm)
    x_lm = jax.random.normal(kx2, (B, settings_lm["hidden_size"]), jnp.float32)
    logits_lm = jax.block_until_ready(nwp_net_forward(x_lm, params_lm, settings_lm))
    ref_lm = reference_forward(x_lm, params_lm, settings_lm)
    assert jnp.allclose(logits_lm, ref_lm, atol=1e-5, rtol=1e-5)

    print("KERNEL_OK")
</pallas_src>

<mosaic_0001>
module attributes {stable_mosaic.version = 11 : i64} {
  func.func @_nwp_mlp_kernel(%arg0: i32, %arg1: memref<16x128xf32, #tpu.memory_space<vmem>>, %arg2: memref<128x128xf32, #tpu.memory_space<vmem>>, %arg3: memref<1x128xf32, #tpu.memory_space<vmem>>, %arg4: memref<128x128xf32, #tpu.memory_space<vmem>>, %arg5: memref<1x128xf32, #tpu.memory_space<vmem>>, %arg6: memref<128x128xf32, #tpu.memory_space<vmem>>, %arg7: memref<1x128xf32, #tpu.memory_space<vmem>>, %arg8: memref<16x128xf32, #tpu.memory_space<vmem>>) attributes {dimension_semantics = [#tpu.dimension_semantics<parallel>], iteration_bounds = array<i64: 1>, scalar_prefetch = 0 : i64, scratch_operands = 0 : i64, tpu.core_type = #tpu.core_type<tc>, window_params = [{transform_indices = @transform_0, window_bounds = array<i64: 16, 128>}, {pipeline_mode = #tpu.pipeline_mode<synchronous>, transform_indices = @transform_1, window_bounds = array<i64: 128, 128>}, {pipeline_mode = #tpu.pipeline_mode<synchronous>, transform_indices = @transform_2, window_bounds = array<i64: 1, 128>}, {pipeline_mode = #tpu.pipeline_mode<synchronous>, transform_indices = @transform_3, window_bounds = array<i64: 128, 128>}, {pipeline_mode = #tpu.pipeline_mode<synchronous>, transform_indices = @transform_4, window_bounds = array<i64: 1, 128>}, {pipeline_mode = #tpu.pipeline_mode<synchronous>, transform_indices = @transform_5, window_bounds = array<i64: 128, 128>}, {pipeline_mode = #tpu.pipeline_mode<synchronous>, transform_indices = @transform_6, window_bounds = array<i64: 1, 128>}, {transform_indices = @transform_7, window_bounds = array<i64: 16, 128>}]} {
    %c0 = arith.constant 0 : index
    %c0_0 = arith.constant 0 : index
    %0 = vector.load %arg1[%c0, %c0_0] : memref<16x128xf32, #tpu.memory_space<vmem>>, vector<16x128xf32>
    %c0_1 = arith.constant 0 : index
    %c0_2 = arith.constant 0 : index
    %1 = vector.load %arg3[%c0_1, %c0_2] : memref<1x128xf32, #tpu.memory_space<vmem>>, vector<1x128xf32>
    %c0_3 = arith.constant 0 : index
    %c0_4 = arith.constant 0 : index
    %2 = vector.load %arg4[%c0_3, %c0_4] : memref<128x128xf32, #tpu.memory_space<vmem>>, vector<128x128xf32>
    %c0_5 = arith.constant 0 : index
    %c0_6 = arith.constant 0 : index
    %3 = vector.load %arg5[%c0_5, %c0_6] : memref<1x128xf32, #tpu.memory_space<vmem>>, vector<1x128xf32>
    %c0_7 = arith.constant 0 : index
    %c0_8 = arith.constant 0 : index
    %4 = vector.load %arg7[%c0_7, %c0_8] : memref<1x128xf32, #tpu.memory_space<vmem>>, vector<1x128xf32>
    %c0_9 = arith.constant 0 : index
    %c0_10 = arith.constant 0 : index
    %5 = vector.load %arg2[%c0_9, %c0_10] : memref<128x128xf32, #tpu.memory_space<vmem>>, vector<128x128xf32>
    %cst = arith.constant dense<0.000000e+00> : vector<16x128xf32>
    %6 = tpu.matmul %0, %5, %cst {dimension_numbers = #tpu.dot_dimension_numbers<[1], [0], [0], [1], [0, 0, 1, 1], [], []>} : vector<16x128xf32>, vector<128x128xf32>, vector<16x128xf32> -> vector<16x128xf32>
    %7 = vector.broadcast %1 : vector<1x128xf32> to vector<16x128xf32>
    %8 = arith.addf %6, %7 : vector<16x128xf32>
    %cst_11 = arith.constant dense<0.000000e+00> : vector<16x128xf32>
    %9 = tpu.matmul %8, %2, %cst_11 {dimension_numbers = #tpu.dot_dimension_numbers<[1], [0], [0], [1], [0, 0, 1, 1], [], []>} : vector<16x128xf32>, vector<128x128xf32>, vector<16x128xf32> -> vector<16x128xf32>
    %10 = vector.broadcast %3 : vector<1x128xf32> to vector<16x128xf32>
    %11 = arith.addf %9, %10 : vector<16x128xf32>
    %cst_12 = arith.constant 0.000000e+00 : f32
    %12 = vector.broadcast %cst_12 : f32 to vector<16x128xf32>
    %13 = arith.maximumf %11, %12 : vector<16x128xf32>
    %cst_13 = arith.constant dense<0.000000e+00> : vector<16x128xf32>
    %14 = tpu.matmul %13, %2, %cst_13 {dimension_numbers = #tpu.dot_dimension_numbers<[1], [0], [0], [1], [0, 0, 1, 1], [], []>} : vector<16x128xf32>, vector<128x128xf32>, vector<16x128xf32> -> vector<16x128xf32>
    %15 = vector.broadcast %3 : vector<1x128xf32> to vector<16x128xf32>
    %16 = arith.addf %14, %15 : vector<16x128xf32>
    %cst_14 = arith.constant 0.000000e+00 : f32
    %17 = vector.broadcast %cst_14 : f32 to vector<16x128xf32>
    %18 = arith.maximumf %16, %17 : vector<16x128xf32>
    %c0_15 = arith.constant 0 : index
    %c0_16 = arith.constant 0 : index
    %19 = vector.load %arg6[%c0_15, %c0_16] : memref<128x128xf32, #tpu.memory_space<vmem>>, vector<128x128xf32>
    %cst_17 = arith.constant dense<0.000000e+00> : vector<16x128xf32>
    %20 = tpu.matmul %18, %19, %cst_17 {dimension_numbers = #tpu.dot_dimension_numbers<[1], [0], [0], [1], [0, 0, 1, 1], [], []>} : vector<16x128xf32>, vector<128x128xf32>, vector<16x128xf32> -> vector<16x128xf32>
    %21 = vector.broadcast %4 : vector<1x128xf32> to vector<16x128xf32>
    %22 = arith.addf %20, %21 : vector<16x128xf32>
    %cst_18 = arith.constant 0.000000e+00 : f32
    %23 = vector.broadcast %cst_18 : f32 to vector<16x128xf32>
    %24 = arith.maximumf %22, %23 : vector<16x128xf32>
    %c0_19 = arith.constant 0 : index
    %c0_20 = arith.constant 0 : index
    %25 = vector.load %arg8[%c0_19, %c0_20] : memref<16x128xf32, #tpu.memory_space<vmem>>, vector<16x128xf32>
    tpu.vector_store %arg8[%c0_19, %c0_20], %24 {strides = array<i32>} : memref<16x128xf32, #tpu.memory_space<vmem>>, vector<16x128xf32>,
    return
  }
  func.func @transform_0(%arg0: i32) -> (i32, i32) {
    %c0_i32 = arith.constant 0 : i32
    %c0_i32_0 = arith.constant 0 : i32
    return %arg0, %c0_i32 : i32, i32
  }
  func.func @transform_1(%arg0: i32) -> (i32, i32) {
    %c0_i32 = arith.constant 0 : i32
    %c0_i32_0 = arith.constant 0 : i32
    %c0_i32_1 = arith.constant 0 : i32
    return %c0_i32, %c0_i32_0 : i32, i32
  }
  func.func @transform_2(%arg0: i32) -> (i32, i32) {
    %c0_i32 = arith.constant 0 : i32
    %c0_i32_0 = arith.constant 0 : i32
    %c0_i32_1 = arith.constant 0 : i32
    return %c0_i32, %c0_i32_0 : i32, i32
  }
  func.func @transform_3(%arg0: i32) -> (i32, i32) {
    %c0_i32 = arith.constant 0 : i32
    %c0_i32_0 = arith.constant 0 : i32
    %c0_i32_1 = arith.constant 0 : i32
    return %c0_i32, %c0_i32_0 : i32, i32
  }
  func.func @transform_4(%arg0: i32) -> (i32, i32) {
    %c0_i32 = arith.constant 0 : i32
    %c0_i32_0 = arith.constant 0 : i32
    %c0_i32_1 = arith.constant 0 : i32
    return %c0_i32, %c0_i32_0 : i32, i32
  }
  func.func @transform_5(%arg0: i32) -> (i32, i32) {
    %c0_i32 = arith.constant 0 : i32
    %c0_i32_0 = arith.constant 0 : i32
    %c0_i32_1 = arith.constant 0 : i32
    return %c0_i32, %c0_i32_0 : i32, i32
  }
  func.func @transform_6(%arg0: i32) -> (i32, i32) {
    %c0_i32 = arith.constant 0 : i32
    %c0_i32_0 = arith.constant 0 : i32
    %c0_i32_1 = arith.constant 0 : i32
    return %c0_i32, %c0_i32_0 : i32, i32
  }
  func.func @transform_7(%arg0: i32) -> (i32, i32) {
    %c0_i32 = arith.constant 0 : i32
    %c0_i32_0 = arith.constant 0 : i32
    return %arg0, %c0_i32 : i32, i32
  }
}

</mosaic_0001>

<bundles_post_ra>
// kernel: tpu_custom_call.1
= control target key start
LH: loop header
LB: loop body
LE: loop exit
PB: predicated region body
PF: predicated region fallthrough
CT: control target
= control target key end

     0   :  { %12 = vsyncpa [#allocation3], 0  ;;  %s1093_s0 = inlined_call_operand.hbm [shape: f32[16,128], index: 0, kind: input, shape index: {}]   ;;  %s1094_s1 = inlined_call_operand.hbm [shape: f32[128,128], index: 1, kind: input, shape index: {}]   ;;  %s1095_s2 = inlined_call_operand.vmem [shape: f32[1,128], index: 2, kind: input, shape index: {}]   ;;  %s1096_s3 = inlined_call_operand.hbm [shape: f32[128,128], index: 3, kind: input, shape index: {}]   ;;  %s1097_s4 = inlined_call_operand.vmem [shape: f32[1,128], index: 4, kind: input, shape index: {}]   ;;  %s1098_s5 = inlined_call_operand.hbm [shape: f32[128,128], index: 5, kind: input, shape index: {}]   ;;  %s1099_s6 = inlined_call_operand.vmem [shape: f32[1,128], index: 6, kind: input, shape index: {}]   ;;  %s1100_s7 = inlined_call_operand.hbm [shape: f32[16,128], index: 7, kind: output, shape index: {}]  }
   0x1   :  { %13 = vsyncpa [#allocation6], 0 }
   0x2   :  { %14 = vsyncpa [#allocation9], 0 }
   0x3   :  { %15 = vsyncpa [#allocation4], 0  ;;  %s948_s24 = smov [#allocation5]   ;;  %s949_s26 = smov [#allocation2]  }
   0x4   :  { %s33_s25 = sshll.u32 %s948_s24, 4  ;;  %s21_s27 = sshll.u32 %s949_s26, 4  ;;  %s34_s25 = int_to_ptr.vmem [resolvable:$true] %s33_s25  ;;  %s995_s27 = int_to_ptr.vmem [resolvable:$true] %s21_s27 }
   0x5   :  { %s830_s30 = scalar_lea.hbm %s1094_s1, 2048 }
   0x6   :  { %p831_p0 = scmp.ne.s32.totalorder %s1094_s1, %s830_s30  ;;  %p834_p1 = scmp.lt.u32.totalorder %s830_s30, %s1094_s1 }
   0x8   :  { %p836_p2 = pnand %p834_p1, %p831_p0 }
   0xa   :  { %839 = shalt.err (!%p836_p2)
}
   0xb   :  { %s840_s12 = scalar_lea.vmem %s34_s25, 2048  ;;  %p845_p4 = scmp.lt.s32.totalorder %s34_s25, %s34_s25 }
   0xc   :  { %p841_p3 = scmp.ne.s32.totalorder %s34_s25, %s840_s12  ;;  %p846_p5 = scmp.lt.s32.totalorder %s840_s12, %s840_s12 }
   0xe   :  { %p847_p6 = por %p846_p5, %p845_p4 }
  0x10   :  { %p848_p7 = pnand %p847_p6, %p841_p3 }
  0x12   :  { %851 = shalt.err (!%p848_p7)
}
  0x13   :  { %s950_s13 = smov 128   ;;  %s951_s14 = smov 8  }
  0x14   :  { %39 = dma.hbm_to_vmem [thread:$0]  %s1094_s1, 2048, %s34_s25, [#allocation6], %s950_s13, %s950_s13, %s951_s14  }
  0x15   :  { %s852_s19 = scalar_lea.hbm %s1093_s0, 256 }
  0x16   :  { %p853_p8 = scmp.ne.s32.totalorder %s1093_s0, %s852_s19  ;;  %p856_p9 = scmp.lt.u32.totalorder %s852_s19, %s1093_s0 }
  0x18   :  { %p858_p10 = pnand %p856_p9, %p853_p8 }
  0x1a   :  { %861 = shalt.err (!%p858_p10)
}
  0x1b   :  { %s862_s24 = scalar_lea.vmem %s995_s27, 256  ;;  %p867_p12 = scmp.lt.s32.totalorder %s995_s27, %s995_s27 }
  0x1c   :  { %p863_p11 = scmp.ne.s32.totalorder %s995_s27, %s862_s24  ;;  %p868_p13 = scmp.lt.s32.totalorder %s862_s24, %s862_s24 }
  0x1e   :  { %p869_p0 = por %p868_p13, %p867_p12 }
  0x20   :  { %p870_p1 = pnand %p869_p0, %p863_p11 }
  0x22   :  { %873 = shalt.err (!%p870_p1)
}
  0x23   :  { %27 = dma.hbm_to_vmem [thread:$0]  %s1093_s0, 256, %s995_s27, [#allocation3], %s950_s13, %s950_s13, %s951_s14  }
  0x24   :  { %s952_s26 = smov [#allocation7]   ;;  %s953_s29 = smov [#allocation8]  }
  0x25   :  { %s47_s28 = sshll.u32 %s952_s26, 4  ;;  %s61_s30 = sshll.u32 %s953_s29, 4  ;;  %s48_s28 = int_to_ptr.vmem [resolvable:$true] %s47_s28  ;;  %s1032_s30 = int_to_ptr.vmem [resolvable:$true] %s61_s30 }
  0x26   :  { %s874_s10 = scalar_lea.hbm %s1096_s3, 2048 }
  0x27   :  { %p875_p2 = scmp.ne.s32.totalorder %s1096_s3, %s874_s10  ;;  %p878_p3 = scmp.lt.u32.totalorder %s874_s10, %s1096_s3 }
  0x29   :  { %p880_p4 = pnand %p878_p3, %p875_p2 }
  0x2b   :  { %883 = shalt.err (!%p880_p4)
}
  0x2c   :  { %s884_s0 = scalar_lea.vmem %s48_s28, 2048  ;;  %p889_p6 = scmp.lt.s32.totalorder %s48_s28, %s48_s28 }
  0x2d   :  { %p885_p5 = scmp.ne.s32.totalorder %s48_s28, %s884_s0  ;;  %p890_p7 = scmp.lt.s32.totalorder %s884_s0, %s884_s0 }
  0x2f   :  { %p891_p8 = por %p890_p7, %p889_p6 }
  0x31   :  { %p892_p9 = pnand %p891_p8, %p885_p5 }
  0x33   :  { %895 = shalt.err (!%p892_p9)
}
  0x34   :  { %53 = dma.hbm_to_vmem [thread:$0]  %s1096_s3, 2048, %s48_s28, [#allocation6], %s950_s13, %s950_s13, %s951_s14  }
  0x35   :  { %s896_s20 = scalar_lea.hbm %s1098_s5, 2048 }
  0x36   :  { %p897_p10 = scmp.ne.s32.totalorder %s1098_s5, %s896_s20  ;;  %p900_p11 = scmp.lt.u32.totalorder %s896_s20, %s1098_s5 }
  0x38   :  { %p902_p12 = pnand %p900_p11, %p897_p10 }
  0x3a   :  { %905 = shalt.err (!%p902_p12)
}
  0x3b   :  { %s906_s1 = scalar_lea.vmem %s1032_s30, 2048  ;;  %p911_p0 = scmp.lt.s32.totalorder %s1032_s30, %s1032_s30 }
  0x3c   :  { %p907_p13 = scmp.ne.s32.totalorder %s1032_s30, %s906_s1  ;;  %p912_p1 = scmp.lt.s32.totalorder %s906_s1, %s906_s1 }
  0x3e   :  { %p913_p2 = por %p912_p1, %p911_p0 }
  0x40   :  { %p914_p3 = pnand %p913_p2, %p907_p13 }
  0x42   :  { %917 = shalt.err (!%p914_p3)
}
  0x43   :  { %67 = dma.hbm_to_vmem [thread:$0]  %s1098_s5, 2048, %s1032_s30, [#allocation9], %s950_s13, %s950_s13, %s951_s14  }
  0x44   :  { %940 = dma.done.wait [#allocation3], 256  }
  0x45   :  { %941 = vsyncadd [#allocation3], 4294967040 }
  0x46   :  { %942 = dma.done.wait [#allocation6], 4096  }
  0x47   :  { %943 = vsyncadd [#allocation6], 4294963200 }
  0x48   :  { %944 = dma.done.wait [#allocation9], 2048  }
  0x49   :  { %945 = vsyncadd [#allocation9], 4294965248  ;;  %v103_v0 = vld [vmem:[#allocation5] sm:$0xff]  ;;  %v104_v1 = vld [vmem:[#allocation5 + $0x8] sm:$0xff]  ;;  %s954_s30 = smov [#allocation10]  }
  0x4a   :  { %v105_v2 = vld [vmem:[#allocation5 + $0x10] sm:$0xff]  ;;  %v695_v3 = vpack.c.bf16 %v104_v1, %v103_v0  ;;  %v106_v4 = vld [vmem:[#allocation5 + $0x18] sm:$0xff]  ;;  %v107_v6 = vld [vmem:[#allocation5 + $0x20] sm:$0xff]  ;;  %s466_s8 = sshll.u32 %s954_s30, 4  ;;  %s467_s8 = int_to_ptr.vmem [resolvable:$true] %s466_s8 }
  0x4b   :  { %v699_v5 = vpack.c.bf16 %v106_v4, %v105_v2  ;;  %v108_v7 = vld [vmem:[#allocation5 + $0x28] sm:$0xff]  ;;  %v109_v9 = vld [vmem:[#allocation5 + $0x30] sm:$0xff]  ;;  %v110_v10 = vld [vmem:[#allocation5 + $0x38] sm:$0xff]  ;;  %s918_s9 = scalar_lea.vmem %s467_s8, 256  ;;  %p923_p5 = scmp.lt.s32.totalorder %s467_s8, %s467_s8 }
  0x4c   :  { %696 = vmatprep.subr.bf16.mxu0 %v695_v3  ;;  %v703_v8 = vpack.c.bf16 %v108_v7, %v107_v6  ;;  %v82_v11 = vld [vmem:[#allocation2] sm:$0xff]  ;;  %v85_v12 = vld [vmem:[#allocation7] sm:$0xff]  ;;  %v86_v13 = vld [vmem:[#allocation7 + $0x8] sm:$0xff]  ;;  %v707_v20 = vpack.c.bf16 %v110_v10, %v109_v9  ;;  %p919_p4 = scmp.ne.s32.totalorder %s467_s8, %s918_s9  ;;  %p924_p6 = scmp.lt.s32.totalorder %s918_s9, %s918_s9 }
  0x4d   :  { %698 = vmatpush3.bf16.msra.mxu0 %v695_v3  ;;  %587 = vmatprep.mubr.f32.mxu0 %v82_v11  ;;  %v87_v14 = vld [vmem:[#allocation7 + $0x10] sm:$0xff]  ;;  %v727_v15 = vpack.c.bf16 %v86_v13, %v85_v12  ;;  %v88_v16 = vld [vmem:[#allocation7 + $0x18] sm:$0xff]  ;;  %v89_v18 = vld [vmem:[#allocation7 + $0x20] sm:$0xff] }
  0x4e   :  { %700 = vmatprep.subr.bf16.mxu0 %v699_v5  ;;  %v731_v17 = vpack.c.bf16 %v88_v16, %v87_v14  ;;  %v90_v19 = vld [vmem:[#allocation7 + $0x28] sm:$0xff]  ;;  %v111_v21 = vld [vmem:[#allocation5 + $0x40] sm:$0xff]  ;;  %v91_v24 = vld [vmem:[#allocation7 + $0x30] sm:$0xff]  ;;  %p925_p7 = por %p924_p6, %p923_p5 }
  0x4f   :  { %728 = vmatprep.subr.bf16.mxu1 %v727_v15  ;;  %v112_v22 = vld [vmem:[#allocation5 + $0x48] sm:$0xff]  ;;  %v735_v23 = vpack.c.bf16 %v90_v19, %v89_v18  ;;  %v92_v25 = vld [vmem:[#allocation7 + $0x38] sm:$0xff]  ;;  %v113_v27 = vld [vmem:[#allocation5 + $0x50] sm:$0xff] }
  0x50   :  { %730 = vmatpush3.bf16.msra.mxu1 %v727_v15  ;;  %v711_v26 = vpack.c.bf16 %v112_v22, %v111_v21  ;;  %v114_v28 = vld [vmem:[#allocation5 + $0x58] sm:$0xff]  ;;  %v739_v29 = vpack.c.bf16 %v92_v25, %v91_v24  ;;  %v93_v30 = vld [vmem:[#allocation7 + $0x40] sm:$0xff]  ;;  %v94_v31 = vld [vmem:[#allocation7 + $0x48] sm:$0xff]  ;;  %p926_p8 = pnand %p925_p7, %p919_p4 }
  0x51   :  { %702 = vmatpush3.bf16.msra.mxu0 %v699_v5  ;;  %732 = vmatprep.subr.bf16.mxu1 %v731_v17  ;;  %v715_v32 = vpack.c.bf16 %v114_v28, %v113_v27  ;;  %v115_v33 = vld [vmem:[#allocation5 + $0x60] sm:$0xff]  ;;  %v116_v34 = vld [vmem:[#allocation5 + $0x68] sm:$0xff]  ;;  %v743_v35 = vpack.c.bf16 %v94_v31, %v93_v30  ;;  %v95_v36 = vld [vmem:[#allocation7 + $0x50] sm:$0xff] }
  0x52   :  { %704 = vmatprep.subr.bf16.mxu0 %v703_v8  ;;  %v96_v37 = vld [vmem:[#allocation7 + $0x58] sm:$0xff]  ;;  %v719_v38 = vpack.c.bf16 %v116_v34, %v115_v33  ;;  %v117_v39 = vld [vmem:[#allocation5 + $0x70] sm:$0xff]  ;;  %v97_v42 = vld [vmem:[#allocation7 + $0x60] sm:$0xff] }
  0x53   :  { %v118_v40 = vld [vmem:[#allocation5 + $0x78] sm:$0xff]  ;;  %v747_v41 = vpack.c.bf16 %v96_v37, %v95_v36  ;;  %v98_v43 = vld [vmem:[#allocation7 + $0x68] sm:$0xff]  ;;  %v99_v47 = vld [vmem:[#allocation7 + $0x70] sm:$0xff] }
  0x54   :  { %734 = vmatpush3.bf16.msra.mxu1 %v731_v17  ;;  %v723_v44 = vpack.c.bf16 %v118_v40, %v117_v39  ;;  %v751_v45 = vpack.c.bf16 %v98_v43, %v97_v42  ;;  %v83_v46 = vld [vmem:[#allocation2 + $0x8] sm:$0xff]  ;;  %v480_v50 = vld [vmem:[%s1095_s2] ss:$0 sm:$0xff]  ;;  %v360_v55 = vld [vmem:[#allocation8] sm:$0xff] }
  0x55   :  { %706 = vmatpush3.bf16.msra.mxu0 %v703_v8  ;;  %736 = vmatprep.subr.bf16.mxu1 %v735_v23  ;;  %v100_v48 = vld [vmem:[#allocation7 + $0x78] sm:$0xff]  ;;  %v361_v56 = vld [vmem:[#allocation8 + $0x8] sm:$0xff]  ;;  %v362_v57 = vld [vmem:[#allocation8 + $0x10] sm:$0xff] }
  0x56   :  { %708 = vmatprep.subr.bf16.mxu0 %v707_v20  ;;  %v755_v49 = vpack.c.bf16 %v100_v48, %v99_v47  ;;  %v791_v58 = vpack.c.bf16 %v361_v56, %v360_v55  ;;  %v363_v59 = vld [vmem:[#allocation8 + $0x18] sm:$0xff]  ;;  %v364_v61 = vld [vmem:[#allocation8 + $0x20] sm:$0xff]  ;;  %v365_v62 = vld [vmem:[#allocation8 + $0x28] sm:$0xff] }
  0x57   :  { %v795_v60 = vpack.c.bf16 %v363_v59, %v362_v57  ;;  %v799_v63 = vpack.c.bf16 %v365_v62, %v364_v61  ;;  %v366_v0 = vld [vmem:[#allocation8 + $0x30] sm:$0xff]  ;;  %v367_v1 = vld [vmem:[#allocation8 + $0x38] sm:$0xff]  ;;  %v368_v3 = vld [vmem:[#allocation8 + $0x40] sm:$0xff] }
  0x58   :  { %738 = vmatpush3.bf16.msra.mxu1 %v735_v23  ;;  %v803_v2 = vpack.c.bf16 %v367_v1, %v366_v0  ;;  %v369_v4 = vld [vmem:[#allocation8 + $0x48] sm:$0xff]  ;;  %v370_v6 = vld [vmem:[#allocation8 + $0x50] sm:$0xff]  ;;  %v371_v7 = vld [vmem:[#allocation8 + $0x58] sm:$0xff] }
  0x59   :  { %710 = vmatpush3.bf16.msra.mxu0 %v707_v20  ;;  %740 = vmatprep.subr.bf16.mxu1 %v739_v29  ;;  %v807_v5 = vpack.c.bf16 %v369_v4, %v368_v3  ;;  %v811_v8 = vpack.c.bf16 %v371_v7, %v370_v6  ;;  %v372_v9 = vld [vmem:[#allocation8 + $0x60] sm:$0xff]  ;;  %v373_v10 = vld [vmem:[#allocation8 + $0x68] sm:$0xff]  ;;  %v481_v12 = vld [vmem:[%s1097_s4] ss:$0 sm:$0xff] }
  0x5a   :  { %712 = vmatprep.subr.bf16.mxu0 %v711_v26  ;;  %v815_v11 = vpack.c.bf16 %v373_v10, %v372_v9  ;;  %v374_v19 = vld [vmem:[#allocation8 + $0x70] sm:$0xff]  ;;  %v375_v20 = vld [vmem:[#allocation8 + $0x78] sm:$0xff] }
  0x5b   :  { %v819_v21 = vpack.c.bf16 %v375_v20, %v374_v19  ;;  %v482_v28 = vld [vmem:[%s1099_s6] ss:$0 sm:$0xff] }
  0x5c   :  { %742 = vmatpush3.bf16.msra.mxu1 %v739_v29 }
  0x5d   :  { %714 = vmatpush3.bf16.msra.mxu0 %v711_v26  ;;  %744 = vmatprep.subr.bf16.mxu1 %v743_v35 }
  0x5e   :  { %716 = vmatprep.subr.bf16.mxu0 %v715_v32 }
  0x60   :  { %746 = vmatpush3.bf16.msra.mxu1 %v743_v35 }
  0x61   :  { %718 = vmatpush3.bf16.msra.mxu0 %v715_v32  ;;  %748 = vmatprep.subr.bf16.mxu1 %v747_v41 }
  0x62   :  { %720 = vmatprep.subr.bf16.mxu0 %v719_v38 }
  0x64   :  { %750 = vmatpush3.bf16.msra.mxu1 %v747_v41 }
  0x65   :  { %722 = vmatpush3.bf16.msra.mxu0 %v719_v38  ;;  %752 = vmatprep.subr.bf16.mxu1 %v751_v45 }
  0x66   :  { %724 = vmatprep.subr.bf16.mxu0 %v723_v44 }
  0x68   :  { %754 = vmatpush3.bf16.msra.mxu1 %v751_v45 }
  0x69   :  { %726 = vmatpush3.bf16.msra.mxu0 %v723_v44  ;;  %756 = vmatprep.subr.bf16.mxu1 %v755_v49 }
  0x6a   :  { %760 = vmatprep.subr.bf16.mxu0 %v727_v15 }
  0x6c   :  { %588 = vmatmul.mubr.f32.vlgmr.msra.gmra.mrb[0].mxu0 %v83_v46  ;;  %758 = vmatpush3.bf16.msra.mxu1 %v755_v49 }
  0x6d   :  { %762 = vmatpush3.bf16.msra.mxu0 %v727_v15  ;;  %792 = vmatprep.subr.bf16.mxu1 %v791_v58 }
  0x6e   :  { %764 = vmatprep.subr.bf16.mxu0 %v731_v17 }
  0x71   :  { %766 = vmatpush3.bf16.msra.mxu0 %v731_v17 }
  0x72   :  { %768 = vmatprep.subr.bf16.mxu0 %v735_v23 }
  0x75   :  { %770 = vmatpush3.bf16.msra.mxu0 %v735_v23 }
  0x76   :  { %772 = vmatprep.subr.bf16.mxu0 %v739_v29 }
  0x79   :  { %774 = vmatpush3.bf16.msra.mxu0 %v739_v29 }
  0x7a   :  { %776 = vmatprep.subr.bf16.mxu0 %v743_v35 }
  0x7d   :  { %778 = vmatpush3.bf16.msra.mxu0 %v743_v35 }
  0x7e   :  { %780 = vmatprep.subr.bf16.mxu0 %v747_v41 }
  0x81   :  { %782 = vmatpush3.bf16.msra.mxu0 %v747_v41 }
  0x82   :  { %784 = vmatprep.subr.bf16.mxu0 %v751_v45 }
  0x85   :  { %786 = vmatpush3.bf16.msra.mxu0 %v751_v45 }
  0x86   :  { %788 = vmatprep.subr.bf16.mxu0 %v755_v49 }
  0x89   :  { %790 = vmatpush3.bf16.msra.mxu0 %v755_v49 }
 0x13f   :  { %v589_v51 = vpop.f32.mrb[0].mxu0 }
 0x140   :  { %v191_v52 = vpop.f32.mrb[1].mxu0  ;;  %v197_v54 = vadd.f32 %v589_v51, %v480_v50 }
 0x141   :  { %v192_v53 = vadd.f32 %v480_v50, %v191_v52 }
 0x143   :  { %622 = vmatprep.mubr.f32.mxu1 %v192_v53 }
 0x144   :  { %623 = vmatmul.mubr.f32.vlgmr.msra.gmra.mrb[0].mxu1 %v197_v54 }
 0x145   :  { %794 = vmatpush3.bf16.msra.mxu1 %v791_v58 }
 0x146   :  { %796 = vmatprep.subr.bf16.mxu1 %v795_v60 }
 0x149   :  { %798 = vmatpush3.bf16.msra.mxu1 %v795_v60 }
 0x14a   :  { %800 = vmatprep.subr.bf16.mxu1 %v799_v63 }
 0x14d   :  { %802 = vmatpush3.bf16.msra.mxu1 %v799_v63 }
 0x14e   :  { %804 = vmatprep.subr.bf16.mxu1 %v803_v2 }
 0x151   :  { %806 = vmatpush3.bf16.msra.mxu1 %v803_v2 }
 0x152   :  { %808 = vmatprep.subr.bf16.mxu1 %v807_v5 }
 0x155   :  { %810 = vmatpush3.bf16.msra.mxu1 %v807_v5 }
 0x156   :  { %812 = vmatprep.subr.bf16.mxu1 %v811_v8 }
 0x159   :  { %814 = vmatpush3.bf16.msra.mxu1 %v811_v8 }
 0x15a   :  { %816 = vmatprep.subr.bf16.mxu1 %v815_v11 }
 0x15d   :  { %818 = vmatpush3.bf16.msra.mxu1 %v815_v11 }
 0x15e   :  { %820 = vmatprep.subr.bf16.mxu1 %v819_v21 }
 0x161   :  { %822 = vmatpush3.bf16.msra.mxu1 %v819_v21 }
 0x217   :  { %v624_v13 = vpop.f32.mrb[0].mxu1 }
 0x218   :  { %v278_v14 = vadd.f32 %v624_v13, %v481_v12  ;;  %v272_v15 = vpop.f32.mrb[1].mxu1 }
 0x219   :  { %v273_v16 = vadd.f32 %v481_v12, %v272_v15 }
 0x21a   :  { %v282_v18 = vmax.f32 %v278_v14, 0.0 }
 0x21b   :  { %v281_v17 = vmax.f32 %v273_v16, 0.0 }
 0x21d   :  { %657 = vmatprep.mubr.f32.mxu0 %v281_v17 }
 0x21e   :  { %658 = vmatmul.mubr.f32.vlgmr.msra.gmra.mrb[2].mxu0 %v282_v18 }
 0x2f1   :  { %v659_v22 = vpop.f32.mrb[2].mxu0 }
 0x2f2   :  { %v355_v23 = vadd.f32 %v659_v22, %v481_v12  ;;  %v349_v24 = vpop.f32.mrb[3].mxu0 }
 0x2f3   :  { %v350_v25 = vadd.f32 %v481_v12, %v349_v24 }
 0x2f4   :  { %v359_v27 = vmax.f32 %v355_v23, 0.0 }
 0x2f5   :  { %v358_v26 = vmax.f32 %v350_v25, 0.0 }
 0x2f7   :  { %692 = vmatprep.mubr.f32.mxu1 %v358_v26 }
 0x2f8   :  { %693 = vmatmul.mubr.f32.vlgmr.msra.gmra.mrb[2].mxu1 %v359_v27 }
 0x3cb   :  { %v694_v29 = vpop.f32.mrb[2].mxu1 }
 0x3cc   :  { %v454_v30 = vadd.f32 %v694_v29, %v482_v28  ;;  %v448_v31 = vpop.f32.mrb[3].mxu1 }
 0x3cd   :  { %v449_v32 = vadd.f32 %v482_v28, %v448_v31 }
 0x3ce   :  { %v458_v33 = vmax.f32 %v454_v30, 0.0 }
 0x3cf   :  { %v457_v34 = vmax.f32 %v449_v32, 0.0 }
 0x3d0   :  { %460 = vst [vmem:[#allocation10 + $0x8] sm:$0xff] %v458_v33 }
 0x3d1   :  { %459 = vst [vmem:[#allocation10] sm:$0xff] %v457_v34 }
 0x3d2   :  { %929 = shalt.err (!%p926_p8)
}
 0x3d3   :  { %s930_s11 = scalar_lea.hbm %s1100_s7, 256 }
 0x3d4   :  { %p931_p9 = scmp.ne.s32.totalorder %s1100_s7, %s930_s11  ;;  %p934_p10 = scmp.lt.u32.totalorder %s930_s11, %s1100_s7 }
 0x3d6   :  { %p936_p11 = pnand %p934_p10, %p931_p9 }
 0x3d8   :  { %939 = shalt.err (!%p936_p11)
}
 0x3d9   :  { %472 = dma.vmem_to_hbm [thread:$0]  %s467_s8, 256, %s1100_s7, [#allocation4], %s950_s13, %s950_s13, %s951_s14  }
 0x3da   :  { %946 = dma.done.wait [#allocation4], 256  }
 0x3db   :  { %947 = vsyncadd [#allocation4], 4294967040 }
 0x3dc   :  { %476 = vsyncpa [#allocation3], 1 }
 0x3dd   :  { %477 = vsyncpa [#allocation6], 1 }
 0x3de   :  { %478 = vsyncpa [#allocation9], 1 }
 0x3df   :  { %479 = vsyncpa [#allocation4], 1 }

</bundles_post_ra>
